<compile_context>
chip_gen: v5e
topology: v5e:2x2
jax: 0.10.0
libtpu: 0.0.40
codegen_flags: <defaults>
</compile_context>

<pallas_src>
import math
import functools

import jax
import jax.numpy as jnp
from jax.experimental import pallas as pl
from jax.experimental.pallas import tpu as pltpu


# --------------------------------------------------------------------------
# Kernels
# --------------------------------------------------------------------------
def _linear_emb_wres_kernel(x_ref, w_ref, b_ref, o_ref, *, compute_dtype):
    """Weight-resident fast path: one (tm, K) x-tile * full (K, N) weight."""
    x = x_ref[...]
    if compute_dtype is not None and x.dtype != compute_dtype:
        x = x.astype(compute_dtype)
    acc = jnp.dot(x, w_ref[...], preferred_element_type=jnp.float32)
    o_ref[...] = (acc + b_ref[...].astype(jnp.float32)).astype(o_ref.dtype)


def _linear_emb_tiled_kernel(x_ref, w_ref, b_ref, o_ref, *scratch,
                             compute_dtype, k_total, tk, needs_k_mask):
    """Tiled fallback: (i, j, k) grid, K innermost reduction.

    When the output dtype is f32 the output block itself is the accumulator
    (it is resident across the K axis); otherwise a f32 VMEM scratch is used.
    """
    acc_ref = scratch[0] if scratch else o_ref
    k = pl.program_id(2)

    @pl.when(k == 0)
    def _():
        acc_ref[...] = jnp.zeros_like(acc_ref)

    x = x_ref[...]
    if compute_dtype is not None and x.dtype != compute_dtype:
        x = x.astype(compute_dtype)
    if needs_k_mask:
        # Last K tile reads past the end of x (garbage, possibly NaN); the
        # weight's padded K rows are zero, so zeroing the x tail makes the
        # contribution exactly 0.  For non-last tiles the mask is all-true.
        col = jax.lax.broadcasted_iota(jnp.int32, x.shape, 1) + k * tk
        x = jnp.where(col < k_total, x, 0).astype(x.dtype)

    acc_ref[...] += jnp.dot(x, w_ref[...], preferred_element_type=jnp.float32)

    @pl.when(k == pl.num_programs(2) - 1)
    def _():
        o_ref[...] = (acc_ref[...] + b_ref[...].astype(jnp.float32)).astype(o_ref.dtype)


# --------------------------------------------------------------------------
# Parameter prep (one-time): fold sqrt(d_model), optionally cast to bf16
# --------------------------------------------------------------------------
def prepare_linear_embeddings_params(weight, bias, d_model, param_dtype=None):
    """weight: [d_model, input_features] (PyTorch layout), bias: [d_model].

    Returns (weight_t_scaled [input_features, d_model], bias_scaled [d_model])
    with sqrt(d_model) folded in, optionally cast (once) to `param_dtype`
    (e.g. jnp.bfloat16 to halve weight HBM traffic and VMEM footprint).
    """
    scale = math.sqrt(d_model)
    weight_t = weight.T * scale
    bias_s = bias * scale
    if param_dtype is not None:
        weight_t = weight_t.astype(param_dtype)
        bias_s = bias_s.astype(param_dtype)
    return weight_t, bias_s


# --------------------------------------------------------------------------
# Wrapper
# --------------------------------------------------------------------------
def _pick_row_tile(m, tm):
    """Clamp the row tile; when it would collapse the parallel grid to a
    single step, shrink it so there are >= 2 steps (v7x megacore)."""
    if tm >= m:
        if m >= 16:
            return ((-(-m // 2)) + 7) // 8 * 8   # round_up(ceil(m/2), 8)
        return m
    return tm


def _vmem_cap_bytes():
    try:
        phys = pltpu.get_tpu_info().vmem_capacity_bytes
    except Exception:
        phys = 128 << 20
    # Leave headroom for compiler internal scratch / double buffering:
    # v5e/v6e (128 MiB) -> 64 MiB cap, v7x (64 MiB) -> 48 MiB cap.
    return min(int(phys) * 3 // 4, 64 << 20)


def linear_embeddings(x, weight_t_scaled, bias_scaled, *,
                      tm=512, tn=512, tk=512,
                      compute_dtype=jnp.bfloat16,
                      force_tiled=False):
    """Pallas equivalent of Linear_Embeddings.forward (scale pre-folded).

    x:               [..., input_features]
    weight_t_scaled: [input_features, d_model]   (sqrt(d_model) folded in)
    bias_scaled:     [d_model]                   (sqrt(d_model) folded in)
    compute_dtype:   dtype for the MXU operands (default bf16; accumulation
                     and bias epilogue are always f32).  Use jnp.float32 for
                     a high-precision path.
    """
    *lead, K = x.shape
    Kw, N = weight_t_scaled.shape
    assert Kw == K, (Kw, K)
    M = math.prod(lead) if lead else 1

    x2d = x.reshape(M, K)
    w2d = weight_t_scaled
    b2d = bias_scaled.reshape(1, N)

    # Weight cast happens once (here or, better, at prep time) - never per tile.
    if compute_dtype is not None and w2d.dtype != compute_dtype:
        w2d = w2d.astype(compute_dtype)

    out_dtype = x.dtype
    x_isz = jnp.dtype(x2d.dtype).itemsize
    w_isz = jnp.dtype(w2d.dtype).itemsize
    o_isz = jnp.dtype(out_dtype).itemsize

    vmem_cap = _vmem_cap_bytes()
    tm = _pick_row_tile(M, tm)

    # ---------------- Fast path: weight resident in VMEM ----------------
    fast_bytes = (2 * K * N * w_isz        # weight (budget 2x to be safe)
                  + 2 * tm * K * x_isz     # double-buffered x row tile
                  + 2 * tm * N * o_isz     # double-buffered output tile
                  + 2 * N * w_isz)         # bias
    use_fast = (not force_tiled) and (fast_bytes + (4 << 20) <= vmem_cap)

    cost = pl.CostEstimate(
        flops=2 * M * K * N,
        transcendentals=0,
        bytes_accessed=M * K * x_isz + K * N * w_isz + N * w_isz + M * N * o_isz,
    )

    if use_fast:
        grid = (pl.cdiv(M, tm),)
        vmem_limit = int(min(max(fast_bytes + (2 << 20), 16 << 20), vmem_cap))
        out2d = pl.pallas_call(
            functools.partial(_linear_emb_wres_kernel, compute_dtype=compute_dtype),
            out_shape=jax.ShapeDtypeStruct((M, N), out_dtype),
            grid_spec=pltpu.PrefetchScalarGridSpec(
                num_scalar_prefetch=0,
                grid=grid,
                in_specs=[
                    pl.BlockSpec((tm, K), lambda i: (i, 0)),   # x row tile
                    pl.BlockSpec((K, N), lambda i: (0, 0)),    # full weight, resident
                    pl.BlockSpec((1, N), lambda i: (0, 0)),    # bias, resident
                ],
                out_specs=pl.BlockSpec((tm, N), lambda i: (i, 0)),
            ),
            compiler_params=pltpu.CompilerParams(
                dimension_semantics=("parallel",),
                vmem_limit_bytes=vmem_limit,
            ),
            cost_estimate=cost,
        )(x2d, w2d, b2d)
        return out2d.reshape(*lead, N)

    # ---------------- Tiled fallback (very large weights) ----------------
    tn = min(tn, N)
    tk = min(tk, K)
    needs_k_mask = (K % tk) != 0
    gk = pl.cdiv(K, tk)
    grid = (pl.cdiv(M, tm), pl.cdiv(N, tn), gk)

    if needs_k_mask:
        # Pad only the (small) weight with zero rows; x is NEVER copied/padded.
        w2d = jnp.pad(w2d, ((0, gk * tk - K), (0, 0)))

    acc_in_out = jnp.dtype(out_dtype) == jnp.dtype(jnp.float32)
    scratch_shapes = [] if acc_in_out else [pltpu.VMEM((tm, tn), jnp.float32)]

    tile_bytes = (2 * tm * tk * x_isz + 2 * tk * tn * w_isz + 2 * tn * w_isz
                  + 2 * tm * tn * o_isz + (0 if acc_in_out else tm * tn * 4))
    vmem_limit = int(min(max(tile_bytes + (4 << 20), 16 << 20), vmem_cap))

    out2d = pl.pallas_call(
        functools.partial(_linear_emb_tiled_kernel,
                          compute_dtype=compute_dtype,
                          k_total=K, tk=tk, needs_k_mask=needs_k_mask),
        out_shape=jax.ShapeDtypeStruct((M, N), out_dtype),
        grid_spec=pltpu.PrefetchScalarGridSpec(
            num_scalar_prefetch=0,
            grid=grid,
            in_specs=[
                pl.BlockSpec((tm, tk), lambda i, j, k: (i, k)),   # x tile
                pl.BlockSpec((tk, tn), lambda i, j, k: (k, j)),   # weight tile
                pl.BlockSpec((1, tn), lambda i, j, k: (0, j)),    # bias tile
            ],
            out_specs=pl.BlockSpec((tm, tn), lambda i, j, k: (i, j)),
            scratch_shapes=scratch_shapes,
        ),
        compiler_params=pltpu.CompilerParams(
            dimension_semantics=("parallel", "parallel", "arbitrary"),
            vmem_limit_bytes=vmem_limit,
        ),
        cost_estimate=cost,
    )(x2d, w2d, b2d)
    return out2d.reshape(*lead, N)


# --------------------------------------------------------------------------
# Self test
# --------------------------------------------------------------------------
if __name__ == "__main__":
    HIGH = jax.lax.Precision.HIGHEST

    # ---- Small strict-f32 test, shapes consistent with the module ----
    batch, seq, input_features, d_model = 2, 8, 16, 32
    kx, kw, kb = jax.random.split(jax.random.PRNGKey(0), 3)

    x = jax.random.normal(kx, (batch, seq, input_features), dtype=jnp.float32)
    bound = 1.0 / math.sqrt(input_features)
    weight = jax.random.uniform(kw, (d_model, input_features),
                                minval=-bound, maxval=bound, dtype=jnp.float32)
    bias = jax.random.uniform(kb, (d_model,),
                              minval=-bound, maxval=bound, dtype=jnp.float32)

    w_t_s, b_s = prepare_linear_embeddings_params(weight, bias, d_model)
    out = linear_embeddings(x, w_t_s, b_s, compute_dtype=jnp.float32)
    out = jax.block_until_ready(out)

    ref = (jnp.einsum("bsk,nk->bsn", x, weight, precision=HIGH) + bias) \
        * math.sqrt(d_model)
    assert out.shape == (batch, seq, d_model)
    assert jnp.allclose(out, ref, atol=2e-4, rtol=1e-5), "small-shape f32 mismatch"

    # ---- Larger test: default bf16 operands, weight-resident fast path ----
    b2, s2, k2, n2 = 2, 384, 192, 384
    kx2, kw2, kb2 = jax.random.split(jax.random.PRNGKey(1), 3)
    x2 = jax.random.normal(kx2, (b2, s2, k2), dtype=jnp.float32)
    bound2 = 1.0 / math.sqrt(k2)
    w2 = jax.random.uniform(kw2, (n2, k2), minval=-bound2, maxval=bound2,
                            dtype=jnp.float32)
    bb2 = jax.random.uniform(kb2, (n2,), minval=-bound2, maxval=bound2,
                             dtype=jnp.float32)

    w2t_bf, bb2_bf = prepare_linear_embeddings_params(
        w2, bb2, n2, param_dtype=jnp.bfloat16)
    out2 = linear_embeddings(x2, w2t_bf, bb2_bf)          # default bf16 compute
    out2 = jax.block_until_ready(out2)

    # Reference with the same bf16-rounded operands, f32 accumulation.
    x2_r = x2.astype(jnp.bfloat16).astype(jnp.float32)
    ref2_bf = (jnp.einsum("bsk,kn->bsn", x2_r, w2t_bf.astype(jnp.float32),
                          precision=HIGH)
               + bb2_bf.astype(jnp.float32))
    assert jnp.allclose(out2, ref2_bf, atol=1e-2, rtol=1e-3), "bf16 fast-path mismatch"

    # ---- Force the tiled fallback (K % tk != 0 -> in-kernel tail masking) ----
    w2t_s, bb2_s = prepare_linear_embeddings_params(w2, bb2, n2)
    out3 = linear_embeddings(x2, w2t_s, bb2_s, tm=256, tn=128, tk=128,
                             compute_dtype=jnp.float32, force_tiled=True)
    out3 = jax.block_until_ready(out3)
    ref3 = (jnp.einsum("bsk,nk->bsn", x2, w2, precision=HIGH) + bb2) \
        * math.sqrt(n2)
    assert jnp.allclose(out3, ref3, atol=2e-3, rtol=1e-4), "tiled-fallback mismatch"

    print("KERNEL_OK")
</pallas_src>

<mosaic_0001>
module attributes {stable_mosaic.version = 11 : i64} {
  func.func @_linear_emb_wres_kernel(%arg0: i32, %arg1: memref<8x16xf32, #tpu.memory_space<vmem>>, %arg2: memref<16x32xf32, #tpu.memory_space<vmem>>, %arg3: memref<1x32xf32, #tpu.memory_space<vmem>>, %arg4: memref<8x32xf32, #tpu.memory_space<vmem>>) attributes {dimension_semantics = [#tpu.dimension_semantics<parallel>], iteration_bounds = array<i64: 2>, scalar_prefetch = 0 : i64, scratch_operands = 0 : i64, tpu.core_type = #tpu.core_type<tc>, window_params = [{transform_indices = @transform_0, window_bounds = array<i64: 8, 16>}, {pipeline_mode = #tpu.pipeline_mode<synchronous>, transform_indices = @transform_1, window_bounds = array<i64: 16, 32>}, {pipeline_mode = #tpu.pipeline_mode<synchronous>, transform_indices = @transform_2, window_bounds = array<i64: 1, 32>}, {transform_indices = @transform_3, window_bounds = array<i64: 8, 32>}]} {
    %c0 = arith.constant 0 : index
    %c0_0 = arith.constant 0 : index
    %0 = vector.load %arg1[%c0, %c0_0] : memref<8x16xf32, #tpu.memory_space<vmem>>, vector<8x16xf32>
    %c0_1 = arith.constant 0 : index
    %c0_2 = arith.constant 0 : index
    %1 = vector.load %arg2[%c0_1, %c0_2] : memref<16x32xf32, #tpu.memory_space<vmem>>, vector<16x32xf32>
    %cst = arith.constant dense<0.000000e+00> : vector<8x32xf32>
    %2 = tpu.matmul %0, %1, %cst {dimension_numbers = #tpu.dot_dimension_numbers<[1], [0], [0], [1], [0, 0, 1, 1], [], []>} : vector<8x16xf32>, vector<16x32xf32>, vector<8x32xf32> -> vector<8x32xf32>
    %c0_3 = arith.constant 0 : index
    %c0_4 = arith.constant 0 : index
    %3 = vector.load %arg3[%c0_3, %c0_4] : memref<1x32xf32, #tpu.memory_space<vmem>>, vector<1x32xf32>
    %4 = vector.broadcast %3 : vector<1x32xf32> to vector<8x32xf32>
    %5 = arith.addf %2, %4 : vector<8x32xf32>
    %c0_5 = arith.constant 0 : index
    %c0_6 = arith.constant 0 : index
    %6 = vector.load %arg4[%c0_5, %c0_6] : memref<8x32xf32, #tpu.memory_space<vmem>>, vector<8x32xf32>
    tpu.vector_store %arg4[%c0_5, %c0_6], %5 {strides = array<i32>} : memref<8x32xf32, #tpu.memory_space<vmem>>, vector<8x32xf32>,
    return
  }
  func.func @transform_0(%arg0: i32) -> (i32, i32) {
    %c0_i32 = arith.constant 0 : i32
    %c0_i32_0 = arith.constant 0 : i32
    return %arg0, %c0_i32 : i32, i32
  }
  func.func @transform_1(%arg0: i32) -> (i32, i32) {
    %c0_i32 = arith.constant 0 : i32
    %c0_i32_0 = arith.constant 0 : i32
    %c0_i32_1 = arith.constant 0 : i32
    return %c0_i32, %c0_i32_0 : i32, i32
  }
  func.func @transform_2(%arg0: i32) -> (i32, i32) {
    %c0_i32 = arith.constant 0 : i32
    %c0_i32_0 = arith.constant 0 : i32
    %c0_i32_1 = arith.constant 0 : i32
    return %c0_i32, %c0_i32_0 : i32, i32
  }
  func.func @transform_3(%arg0: i32) -> (i32, i32) {
    %c0_i32 = arith.constant 0 : i32
    %c0_i32_0 = arith.constant 0 : i32
    return %arg0, %c0_i32 : i32, i32
  }
}

</mosaic_0001>

<bundles_post_ra>
// kernel: tpu_custom_call.1
= control target key start
LH: loop header
LB: loop body
LE: loop exit
PB: predicated region body
PF: predicated region fallthrough
CT: control target
= control target key end

     0   :  { %8 = vsyncpa [#allocation3], 0  ;;  %s703_s0 = inlined_call_operand.hbm [shape: f32[16,16], index: 0, kind: input, shape index: {}]   ;;  %s704_s1 = inlined_call_operand.hbm [shape: f32[16,32], index: 1, kind: input, shape index: {}]   ;;  %s705_s2 = inlined_call_operand.vmem [shape: f32[1,32], index: 2, kind: input, shape index: {}]   ;;  %s706_s3 = inlined_call_operand.hbm [shape: f32[16,32], index: 3, kind: output, shape index: {}]  }
   0x1   :  { %10 = vsyncpa [#allocation3 + $0x1], 0 }
   0x2   :  { %11 = vsyncpa [#allocation6], 0 }
   0x3   :  { %12 = vsyncpa [#allocation4], 0 }
   0x4   :  { %14 = vsyncpa [#allocation4 + $0x1], 0  ;;  %s564_s12 = smov 0   ;;  %s566_s13 = smov 0  }
   0x5   :  { %s568_s14 = smov 0   ;;  %s570_s15 = smov 0  }
   0x6 LB: > { %s130_s18 = sshll.u32 %s704_s1, 4  ;;  %s588_s19 = sadd.s32 4294967295, %s539_s15   ;;  %s539_s15 = sphi %s570_s15, %s716_s15   ;;  %s535_s14 = sphi %s568_s14, %s715_s14   ;;  %s531_s13 = sphi %s566_s13, %s714_s13   ;;  %s527_s12 = sphi %s564_s12, %s713_s12   ;;  %s131_s18 = int_to_ptr.hbm [resolvable:$true] %s130_s18 }
   0x7   : > { %p335_p0 = scmp.ge.s32.totalorder %s539_s15, 1  ;;  %p41_p1 = scmp.eq.s32.totalorder %s588_s19, 0 }
   0x8   : > { %p119_p2 = scmp.lt.s32.totalorder %s539_s15, 3  ;;  %s541_s21 = smov [#allocation5]  }
   0x9   : > { %s132_s22 = sshll.u32 %s541_s21, 4  ;;  %s542_s23 = smov 128   ;;  %s133_s22 = int_to_ptr.vmem [resolvable:$true] %s132_s22 }
   0xa   : > { %p593_p3 = pnand %p335_p0, %p119_p2  ;;  %s543_s24 = smov 8  }
   0xb   : > { %s334_s25 = sadd.s32 4294967294, %s539_s15   ;;  %s604_s26 = sadd.s32 1, %s539_s15  }
   0xc   : > { %p357_p4 = pneg %p593_p3  ;;  %s27_s27 = sadd.s32 1, %s535_s14 }
   0xd   : > { %s24_s28 = ssub.s32 %s539_s15, %s604_s26  ;;  %p34_p7 = scmp.ne.s32.totalorder %s535_s14, %s531_s13 }
   0xe   : > { %p358_p6 = pnand %p357_p4, %p41_p1  ;;  %p25_p8 = scmp.eq.s32.totalorder %s24_s28, 0 }
   0xf   : > { %p35_p9 = scmp.eq.s32.totalorder %s539_s15, 0  ;;  %p40_p10 = scmp.ne.s32.totalorder %s531_s13, %s527_s12 }
  0x10   : > { %360 = dma.hbm_to_vmem [thread:$0]  (!%p358_p6), %s131_s18, 256, %s133_s22, [#allocation6], %s542_s23, %s542_s23, %s543_s24  }
  0x11   : > { %p106_p11 = scmp.eq.s32.totalorder %s588_s19, 1  ;;  %p620_p12 = por %p41_p1, %p40_p10 }
  0x12   : > { %s616_s29 = scalar_select %p25_p8, %s535_s14, %s27_s27  }
  0x13   : > { %p624_p13 = por %p106_p11, %p34_p7  ;;  %p112_p0 = scmp.eq.s32.totalorder %s334_s25, 1 }
  0x14   : > { %p36_p2 = por %p35_p9, %p34_p7  ;;  %s149_s5 = sand.u32 1, %s535_s14  }
  0x15   : > { %p629_p4 = por %p112_p0, %p40_p10  ;;  %p370_p6 = scmp.lt.s32.totalorder %s539_s15, 2 }
  0x16   : > { %s338_s7 = sshll.u32 %s149_s5, 3  ;;  %s339_s8 = sshll.u32 %s539_s15, 3 }
  0x17   : > { %s157_s11 = scalar_lea.hbm %s703_s0, %s339_s8  ;;  %s153_s17 = scalar_lea.vmem [#allocation2], %s338_s7 }
  0x18   : > { %s159_s16 = sshll.u32 %s157_s11, 4  ;;  %s161_s18 = sshll.u32 %s153_s17, 4  ;;  %s160_s16 = int_to_ptr.hbm [resolvable:$true] %s159_s16  ;;  %s162_s18 = int_to_ptr.vmem [resolvable:$true] %s161_s18 }
  0x19   : > { %p638_p8 = pnand %p370_p6, %p36_p2  ;;  %s150_s22 = scalar_lea.sflag [#allocation3], %s149_s5 }
  0x1a   : > { %s439_s23 = sshra.s32 %s160_s16, 4  ;;  %s446_s28 = scalar_lea.hbm %s703_s0, 16  ;;  %s440_s23 = int_to_ptr.hbm [resolvable:$true] %s439_s23 }
  0x1b   : > { %s441_s24 = scalar_lea.hbm %s440_s23, 8  ;;  %p443_p9 = pneg %p638_p8 }
  0x1c   : > { %p442_p7 = scmp.ne.s32.totalorder %s440_s23, %s441_s24  ;;  %p447_p0 = scmp.lt.s32.totalorder %s440_s23, %s703_s0 }
  0x1d   : > { %p448_p2 = scmp.lt.s32.totalorder %s446_s28, %s441_s24 }
  0x1e   : > { %p444_p10 = pnand %p443_p9, %p442_p7 }
  0x1f   : > { %p449_p6 = por %p448_p2, %p447_p0 }
  0x20   : > { %p445_p11 = pneg %p444_p10 }
  0x22   : > { %p450_p5 = pnand %p449_p6, %p445_p11 }
  0x24   : > { %453 = shalt.err (!%p450_p5)
}
  0x25   : > { %364 = dma.hbm_to_vmem [thread:$0]  (!%p638_p8), %s160_s16, 128, %s162_s18, %s150_s22  }
  0x26   : > { %170 = sbr.rel (%p593_p3) target bundleno = 181 (0xb5), region = 32  ;;  %s655_s5 = sand.u32 (!%p593_p3), 1, %s531_s13  }
  0x27   : > { %s341_s9 = sshll.u32 (!%p593_p3), %s655_s5, 3  ;;  %s173_s10 = scalar_lea.sflag (!%p593_p3), [#allocation3], %s655_s5 }
  0x28   : > { %s176_s11 = scalar_lea.vmem (!%p593_p3), [#allocation2], %s341_s9 }
  0x2b   : > { %514 = dma.done.wait (%p620_p12), %s173_s10, 128  }
  0x2c   : > { %516 = vsyncadd (%p620_p12), %s173_s10, 4294967168 }
  0x2d   : > { %518 = dma.done.wait (%p41_p1), [#allocation6], 256  }
  0x2e   : > { %520 = vsyncadd (%p41_p1), [#allocation6], 4294967040  ;;  %v207_v0 = vld [vmem:[#allocation5 + $0x8] sm:$0xff]  ;;  %v206_v1 = vld [vmem:[#allocation5] sm:$0xff]  ;;  %vm212_vm0 = vcmask 130048   ;;  %s346_s20 = sshll.u32 %s588_s19, 3 }
  0x2f   : > { %230 = vmatpush.msra.mxu0 %v207_v0  ;;  %v205_v2 = vld [vmem:[%s176_s11] sm:$0xff]  ;;  %s249_s30 = scalar_lea.hbm %s706_s3, %s346_s20  ;;  %s204_s22 = scalar_lea.vmem [#allocation7], %s341_s9  ;;  %vm236_vm1 = vcmask 261120  }
  0x30   : > { %v408_v3 = vld [vmem:[%s705_s2] ss:$0 sm:$0xff]  ;;  %s251_s23 = sshll.u32 %s204_s22, 4  ;;  %s253_s24 = sshll.u32 %s249_s30, 4  ;;  %s252_s23 = int_to_ptr.vmem [resolvable:$true] %s251_s23  ;;  %s254_s24 = int_to_ptr.hbm [resolvable:$true] %s253_s24 }
  0x31   : > { %231 = vmatpush.msra.mxu0 %v206_v1  ;;  %s239_s25 = scalar_lea.sflag [#allocation4], %s655_s5  ;;  %s483_s19 = sshra.s32 %s254_s24, 4  ;;  %s484_s19 = int_to_ptr.hbm [resolvable:$true] %s483_s19 }
  0x32   : > { %344 = vmatmul.msk.f32.vlgmr.msra.gmra.mxu0 %vm212_vm0, %v205_v2  ;;  %s485_s27 = scalar_lea.hbm %s484_s19, 8  ;;  %s489_s8 = scalar_lea.hbm %s706_s3, 16 }
  0x33   : > { %p486_p1 = scmp.ne.s32.totalorder %s484_s19, %s485_s27  ;;  %p490_p12 = scmp.lt.s32.totalorder %s484_s19, %s706_s3 }
  0x34   : > { %p491_p8 = scmp.lt.s32.totalorder %s489_s8, %s485_s27 }
  0x35   : > { %p487_p3 = pnand %p486_p1, %p624_p13 }
  0x36   : > { %p492_p7 = por %p491_p8, %p490_p12 }
  0x37   : > { %p488_p5 = pneg %p487_p3 }
  0x39   : > { %p493_p9 = pnand %p492_p7, %p488_p5 }
  0xaf   : > { %v233_v4 = vpop.f32.mrf.mxu0 }
  0xb0   : > { %v234_v5 = vadd.f32 %v408_v3, %v233_v4 }
  0xb2   : > { %237 = vst.msk [vmem:[%s204_s22] sm:$0xff] %vm236_vm1, %v234_v5 }
  0xb3   : > { %496 = shalt.err (!%p493_p9)
}
  0xb4   : > { %355 = dma.vmem_to_hbm [thread:$0]  (%p624_p13), %s252_s23, 128, %s254_s24, %s239_s25  }
  0xb5 PF: > { %s265_s5 = sand.u32 1, %s527_s12   ;;  %p712_p10 = scmp.ge.s32.totalorder %s539_s15, 2 }
  0xb6   : > { %s266_s11 = scalar_lea.sflag [#allocation4], %s265_s5 }
  0xb7   : > { %p366_p11 = pnand %p712_p10, %p629_p4 }
  0xb9   : > { %p367_p0 = pneg %p366_p11 }
  0xbb   : > { %522 = dma.done.wait (%p367_p0), %s266_s11, 128  }
  0xbc   : > { %524 = vsyncadd (%p367_p0), %s266_s11, 4294967168  ;;  %p17_p2 = scmp.ge.s32.totalorder %s604_s26, 4   ;;  %s713_s12 = smov %s531_s13 }
  0xbd   : > { %s714_s13 = smov %s535_s14  ;;  %s715_s14 = smov %s616_s29 }
  0xbe   : > { %s716_s15 = smov %s604_s26  ;;  %19 = sbr.rel (!%p17_p2) target bundleno = 6 (0x6), region = 81 }
  0xc3   :  { %272 = vsyncpa [#allocation3], 1 }
  0xc4   :  { %274 = vsyncpa [#allocation3 + $0x1], 1 }
  0xc5   :  { %275 = vsyncpa [#allocation6], 1 }
  0xc6   :  { %276 = vsyncpa [#allocation4], 1 }
  0xc7   :  { %278 = vsyncpa [#allocation4 + $0x1], 1 }

</bundles_post_ra>
